<compile_context>
chip_gen: v7x
topology: tpu7x:2x2x1
jax: 0.10.0
libtpu: 0.0.40
codegen_flags: <defaults>
</compile_context>

<pallas_src>
import functools
import math

import jax
import jax.numpy as jnp
from jax import lax
from jax.experimental import pallas as pl
from jax.experimental.pallas import tpu as pltpu


def _head_kernel(x_ref, w_qkv_ref, b_qkv_ref, out_ref, *, n_embd, head_size):
    xb = x_ref[...]                                   # (Bt, T, C) f32
    Bt, T, C = xb.shape
    hs = head_size

    # Flatten batch rows into the matmul M dim (trailing dim unchanged, so the
    # sublane merge is layout-free).
    x_bf = xb.reshape(Bt * T, C).astype(jnp.bfloat16)
    w_qkv = w_qkv_ref[...].astype(jnp.bfloat16)       # (C, 3*hs)

    # Fused QKV projection: one MXU pass over the activations.
    qkv = jnp.dot(x_bf, w_qkv, preferred_element_type=jnp.float32)
    qkv = qkv + b_qkv_ref[...]                        # (Bt*T, 3*hs) f32

    q = qkv[:, 0 * hs:1 * hs]
    k = qkv[:, 1 * hs:2 * hs]
    v = qkv[:, 2 * hs:3 * hs]

    # Reference scales scores by n_embd ** -0.5; fold it into Q once.
    q = q * jnp.float32(float(n_embd) ** (-0.5))

    q3 = q.reshape(Bt, T, hs).astype(jnp.bfloat16)
    k3 = k.reshape(Bt, T, hs).astype(jnp.bfloat16)
    v3 = v.reshape(Bt, T, hs).astype(jnp.bfloat16)

    # Batched scores; contraction over the trailing dim (no explicit transpose).
    wei = jnp.einsum('bqd,bkd->bqk', q3, k3,
                     preferred_element_type=jnp.float32)     # (Bt, T, T) f32

    # Causal (lower-triangular) mask; large-negative finite instead of -inf.
    row = lax.broadcasted_iota(jnp.int32, (T, T), 0)
    col = lax.broadcasted_iota(jnp.int32, (T, T), 1)
    wei = jnp.where((row >= col)[None, :, :], wei, jnp.float32(-1e30))

    # Numerically-stable softmax in f32; exp + reciprocal go to the EUP slot.
    wei = wei - jnp.max(wei, axis=-1, keepdims=True)
    p = jnp.exp(wei)
    inv = pl.reciprocal(jnp.sum(p, axis=-1, keepdims=True), approx=True)
    p = p * inv

    # Attention-weighted sum of values (dropout = identity in eval mode).
    out = jnp.einsum('bqk,bkd->bqd', p.astype(jnp.bfloat16), v3,
                     preferred_element_type=jnp.float32)     # (Bt, T, hs)
    out_ref[...] = out.astype(out_ref.dtype)


def head_forward(x, params, block_b=None):
    """x: (B, T, C) float32.  params: (wq, bq, wk, bk, wv, bv).

    Weights are stored as (in_features, out_features); biases as (1, out).
    """
    B, T, C = x.shape
    wq, bq, wk, bk, wv, bv = params
    head_size = wq.shape[1]

    # Fuse the three projections into a single (C, 3*hs) matmul operand.
    w_qkv = jnp.concatenate([wq, wk, wv], axis=1)       # (C, 3*hs)
    b_qkv = jnp.concatenate([bq, bk, bv], axis=1)       # (1, 3*hs)

    # Batch rows per grid step: raise the MXU M dim toward ~256 rows while
    # keeping block_b a divisor of B.
    if block_b is None:
        target = max(1, 256 // max(T, 1))
        block_b = 1
        for d in range(1, B + 1):
            if B % d == 0 and d <= target:
                block_b = d
    grid = (B // block_b,)

    kernel = functools.partial(_head_kernel, n_embd=C, head_size=head_size)

    x_spec = pl.BlockSpec((block_b, T, C), lambda b: (b, 0, 0))
    w_spec = pl.BlockSpec(w_qkv.shape, lambda b: (0, 0))
    b_spec = pl.BlockSpec(b_qkv.shape, lambda b: (0, 0))
    out_spec = pl.BlockSpec((block_b, T, head_size), lambda b: (b, 0, 0))

    # Explicit VMEM budget: double-buffered x/out blocks + double-buffered
    # fused weights + f32/bf16 intermediates, with generous headroom.
    f32 = 4
    est = (2 * block_b * T * (C + head_size) * f32               # x / out blocks (x2 buf)
           + 2 * (C * 3 * head_size + 3 * head_size) * f32       # fused W + b (x2 buf)
           + (block_b * T * C                                    # bf16 x (slack as f32)
              + 4 * block_b * T * 3 * head_size                  # qkv + q/k/v copies
              + 2 * block_b * T * T) * f32)                      # wei, p
    vmem_limit = int(min(max(4 * est, 16 << 20), 96 << 20))

    return pl.pallas_call(
        kernel,
        out_shape=jax.ShapeDtypeStruct((B, T, head_size), jnp.float32),
        grid=grid,
        in_specs=[x_spec, w_spec, b_spec],
        out_specs=out_spec,
        compiler_params=pltpu.CompilerParams(
            dimension_semantics=("parallel",),
            vmem_limit_bytes=vmem_limit),
    )(x, w_qkv, b_qkv)


def _head_reference(x, params):
    """Pure-JAX f32 reference of Head.forward (eval mode)."""
    wq, bq, wk, bk, wv, bv = params
    B, T, C = x.shape
    q = x @ wq + bq
    k = x @ wk + bk
    v = x @ wv + bv
    wei = jnp.einsum('bqd,bkd->bqk', q, k) * (C ** -0.5)
    mask = jnp.tril(jnp.ones((T, T), bool))
    wei = jnp.where(mask[None], wei, -jnp.inf)
    p = jax.nn.softmax(wei, axis=-1)
    return jnp.einsum('bqk,bkd->bqd', p, v)


if __name__ == "__main__":
    # Small shapes consistent with the module: block_size = T.
    B, T, C, head_size = 2, 8, 32, 8

    key = jax.random.PRNGKey(0)
    kx, kq, kk, kv = jax.random.split(key, 4)

    def linear_params(k, fan_in, fan_out):
        kw, kb = jax.random.split(k)
        bound = 1.0 / math.sqrt(fan_in)
        w = jax.random.uniform(kw, (fan_in, fan_out), jnp.float32, -bound, bound)
        b = jax.random.uniform(kb, (1, fan_out), jnp.float32, -bound, bound)
        return w, b

    wq, bq = linear_params(kq, C, head_size)
    wk, bk = linear_params(kk, C, head_size)
    wv, bv = linear_params(kv, C, head_size)
    params = (wq, bq, wk, bk, wv, bv)

    x = jax.random.normal(kx, (B, T, C), jnp.float32)

    out = head_forward(x, params)
    out = jax.block_until_ready(out)

    assert out.shape == (B, T, head_size)
    assert bool(jnp.all(jnp.isfinite(out)))

    # Sanity check vs f32 reference (loose tolerance: bf16 MXU operands +
    # approx reciprocal in softmax normalization).
    ref = _head_reference(x, params)
    assert bool(jnp.allclose(out, ref, atol=5e-2, rtol=5e-2))

    print("KERNEL_OK")
</pallas_src>

<mosaic_0001>
module attributes {stable_mosaic.version = 11 : i64} {
  func.func @_head_kernel(%arg0: i32, %arg1: memref<2x8x32xf32, #tpu.memory_space<vmem>>, %arg2: memref<32x24xf32, #tpu.memory_space<vmem>>, %arg3: memref<1x24xf32, #tpu.memory_space<vmem>>, %arg4: memref<2x8x8xf32, #tpu.memory_space<vmem>>) attributes {dimension_semantics = [#tpu.dimension_semantics<parallel>], iteration_bounds = array<i64: 1>, scalar_prefetch = 0 : i64, scratch_operands = 0 : i64, tpu.core_type = #tpu.core_type<tc>, window_params = [{transform_indices = @transform_0, window_bounds = array<i64: 2, 8, 32>}, {pipeline_mode = #tpu.pipeline_mode<synchronous>, transform_indices = @transform_1, window_bounds = array<i64: 32, 24>}, {pipeline_mode = #tpu.pipeline_mode<synchronous>, transform_indices = @transform_2, window_bounds = array<i64: 1, 24>}, {transform_indices = @transform_3, window_bounds = array<i64: 2, 8, 8>}]} {
    %c0 = arith.constant 0 : index
    %c0_0 = arith.constant 0 : index
    %c0_1 = arith.constant 0 : index
    %0 = vector.load %arg1[%c0, %c0_0, %c0_1] : memref<2x8x32xf32, #tpu.memory_space<vmem>>, vector<2x8x32xf32>
    %1 = vector.shape_cast %0 : vector<2x8x32xf32> to vector<16x32xf32>
    %2 = arith.truncf %1 : vector<16x32xf32> to vector<16x32xbf16>
    %c0_2 = arith.constant 0 : index
    %c0_3 = arith.constant 0 : index
    %3 = vector.load %arg2[%c0_2, %c0_3] : memref<32x24xf32, #tpu.memory_space<vmem>>, vector<32x24xf32>
    %4 = arith.truncf %3 : vector<32x24xf32> to vector<32x24xbf16>
    %cst = arith.constant dense<0.000000e+00> : vector<16x24xf32>
    %5 = tpu.matmul %2, %4, %cst {dimension_numbers = #tpu.dot_dimension_numbers<[1], [0], [0], [1], [0, 0, 1, 1], [], []>} : vector<16x32xbf16>, vector<32x24xbf16>, vector<16x24xf32> -> vector<16x24xf32>
    %c0_4 = arith.constant 0 : index
    %c0_5 = arith.constant 0 : index
    %6 = vector.load %arg3[%c0_4, %c0_5] : memref<1x24xf32, #tpu.memory_space<vmem>>, vector<1x24xf32>
    %7 = vector.broadcast %6 : vector<1x24xf32> to vector<16x24xf32>
    %8 = arith.addf %5, %7 : vector<16x24xf32>
    %9 = vector.extract_strided_slice %8 {offsets = [0, 0], sizes = [16, 8], strides = [1, 1]} : vector<16x24xf32> to vector<16x8xf32>
    %10 = vector.extract_strided_slice %8 {offsets = [0, 8], sizes = [16, 8], strides = [1, 1]} : vector<16x24xf32> to vector<16x8xf32>
    %11 = vector.extract_strided_slice %8 {offsets = [0, 16], sizes = [16, 8], strides = [1, 1]} : vector<16x24xf32> to vector<16x8xf32>
    %cst_6 = arith.constant 0.176776692 : f32
    %12 = vector.broadcast %cst_6 : f32 to vector<16x8xf32>
    %13 = arith.mulf %9, %12 : vector<16x8xf32>
    %14 = vector.shape_cast %13 : vector<16x8xf32> to vector<2x8x8xf32>
    %15 = arith.truncf %14 : vector<2x8x8xf32> to vector<2x8x8xbf16>
    %16 = vector.shape_cast %10 : vector<16x8xf32> to vector<2x8x8xf32>
    %17 = arith.truncf %16 : vector<2x8x8xf32> to vector<2x8x8xbf16>
    %18 = vector.shape_cast %11 : vector<16x8xf32> to vector<2x8x8xf32>
    %19 = arith.truncf %18 : vector<2x8x8xf32> to vector<2x8x8xbf16>
    "tpu.trace_start"() <{level = 10 : i32, message = "bqd,bkd->bqk"}> : () -> ()
    %cst_7 = arith.constant dense<0.000000e+00> : vector<2x8x8xf32>
    %20 = tpu.matmul %15, %17, %cst_7 {dimension_numbers = #tpu.dot_dimension_numbers<[2], [2], [1], [1], [0, 0, 0, 1, 1, 1], [0], [0]>} : vector<2x8x8xbf16>, vector<2x8x8xbf16>, vector<2x8x8xf32> -> vector<2x8x8xf32>
    "tpu.trace_stop"() : () -> ()
    %21 = tpu.iota {dimensions = array<i32: 0>} : vector<8x8xi32>
    %22 = tpu.iota {dimensions = array<i32: 1>} : vector<8x8xi32>
    %23 = arith.cmpi sge, %21, %22 : vector<8x8xi32>
    %24 = vector.shape_cast %23 : vector<8x8xi1> to vector<1x8x8xi1>
    %cst_8 = arith.constant -1.000000e+30 : f32
    %25 = vector.shape_cast %24 : vector<1x8x8xi1> to vector<1x8x8xi1>
    %26 = vector.broadcast %25 : vector<1x8x8xi1> to vector<2x8x8xi1>
    %27 = vector.broadcast %cst_8 : f32 to vector<2x8x8xf32>
    %28 = arith.select %26, %20, %27 : vector<2x8x8xi1>, vector<2x8x8xf32>
    %cst_9 = arith.constant dense<0xFF800000> : vector<2x8xf32>
    %29 = vector.multi_reduction <maximumf>, %28, %cst_9 [2] : vector<2x8x8xf32> to vector<2x8xf32>
    %30 = vector.shape_cast %29 : vector<2x8xf32> to vector<2x8x1xf32>
    %31 = vector.broadcast %30 : vector<2x8x1xf32> to vector<2x8x8xf32>
    %32 = arith.subf %28, %31 : vector<2x8x8xf32>
    %33 = math.exp %32 : vector<2x8x8xf32>
    %cst_10 = arith.constant dense<0.000000e+00> : vector<2x8xf32>
    %34 = vector.multi_reduction <add>, %33, %cst_10 [2] : vector<2x8x8xf32> to vector<2x8xf32>
    %35 = vector.shape_cast %34 : vector<2x8xf32> to vector<2x8x1xf32>
    %36 = tpu.reciprocal %35 {approx = true} : vector<2x8x1xf32> -> vector<2x8x1xf32>
    %37 = vector.broadcast %36 : vector<2x8x1xf32> to vector<2x8x8xf32>
    %38 = arith.mulf %33, %37 : vector<2x8x8xf32>
    %39 = arith.truncf %38 : vector<2x8x8xf32> to vector<2x8x8xbf16>
    "tpu.trace_start"() <{level = 10 : i32, message = "bqk,bkd->bqd"}> : () -> ()
    %cst_11 = arith.constant dense<0.000000e+00> : vector<2x8x8xf32>
    %40 = tpu.matmul %39, %19, %cst_11 {dimension_numbers = #tpu.dot_dimension_numbers<[2], [1], [1], [2], [0, 0, 0, 1, 1, 2], [0], [0]>} : vector<2x8x8xbf16>, vector<2x8x8xbf16>, vector<2x8x8xf32> -> vector<2x8x8xf32>
    "tpu.trace_stop"() : () -> ()
    %c0_12 = arith.constant 0 : index
    %c0_13 = arith.constant 0 : index
    %c0_14 = arith.constant 0 : index
    %41 = vector.load %arg4[%c0_12, %c0_13, %c0_14] : memref<2x8x8xf32, #tpu.memory_space<vmem>>, vector<2x8x8xf32>
    tpu.vector_store %arg4[%c0_12, %c0_13, %c0_14], %40 {strides = array<i32>} : memref<2x8x8xf32, #tpu.memory_space<vmem>>, vector<2x8x8xf32>,
    return
  }
  func.func @transform_0(%arg0: i32) -> (i32, i32, i32) {
    %c0_i32 = arith.constant 0 : i32
    %c0_i32_0 = arith.constant 0 : i32
    %c0_i32_1 = arith.constant 0 : i32
    return %arg0, %c0_i32, %c0_i32_0 : i32, i32, i32
  }
  func.func @transform_1(%arg0: i32) -> (i32, i32) {
    %c0_i32 = arith.constant 0 : i32
    %c0_i32_0 = arith.constant 0 : i32
    %c0_i32_1 = arith.constant 0 : i32
    return %c0_i32, %c0_i32_0 : i32, i32
  }
  func.func @transform_2(%arg0: i32) -> (i32, i32) {
    %c0_i32 = arith.constant 0 : i32
    %c0_i32_0 = arith.constant 0 : i32
    %c0_i32_1 = arith.constant 0 : i32
    return %c0_i32, %c0_i32_0 : i32, i32
  }
  func.func @transform_3(%arg0: i32) -> (i32, i32, i32) {
    %c0_i32 = arith.constant 0 : i32
    %c0_i32_0 = arith.constant 0 : i32
    %c0_i32_1 = arith.constant 0 : i32
    return %arg0, %c0_i32, %c0_i32_0 : i32, i32, i32
  }
}

</mosaic_0001>

<bundles_post_ra>
// kernel: tpu_custom_call.1
= control target key start
LH: loop header
LB: loop body
LE: loop exit
PB: predicated region body
PF: predicated region fallthrough
CT: control target
= control target key end

     0   :  { %v418_v3 = vmov 0.0   ;;  %vm419_vm0 = vmmov 0   ;;  %s497_s0 = inlined_call_operand.vmem [shape: f32[2,8,32], index: 0, kind: input, shape index: {}]   ;;  %s498_s1 = inlined_call_operand.vmem [shape: f32[32,24], index: 1, kind: input, shape index: {}]   ;;  %s499_s2 = inlined_call_operand.vmem [shape: f32[1,24], index: 2, kind: input, shape index: {}]   ;;  %s500_s3 = inlined_call_operand.hbm [shape: f32[2,8,8], index: 3, kind: output, shape index: {}]  }
   0x1   :  { %v19_v0 = vld [vmem:[%s498_s1] sm:$0xff]  ;;  %v20_v1 = vld [vmem:[%s498_s1 + $0x8] sm:$0xff]  ;;  %v21_v2 = vld [vmem:[%s498_s1 + $0x10] sm:$0xff]  ;;  %347 = vmatprep.subr.bf16.mxu0 %v418_v3  ;;  %351 = vmatprep.mubr.msk.bf16.mxu0 %vm419_vm0, %v418_v3 }
   0x2   :  { %v23_v4 = vpack.c.bf16 %v20_v1, %v19_v0  ;;  %v22_v5 = vld [vmem:[%s498_s1 + $0x18] sm:$0xff]  ;;  %355 = vmatprep.subr.bf16.mxu1 %v418_v3  ;;  %357 = vmatprep.mubr.msk.bf16.mxu1 %vm419_vm0, %v418_v3 }
   0x3   :  { %8 = vsyncpa [#allocation3], 0  ;;  %v24_v6 = vpack.c.bf16 %v22_v5, %v21_v2  ;;  %v16_v7 = vld [vmem:[%s497_s0] sm:$0xff]  ;;  %v17_v8 = vld [vmem:[%s497_s0 + $0x8] sm:$0xff]  ;;  %vm32_vm1 = vcmask 261120   ;;  %s420_s0 = smov 120   ;;  %v182_v27 = vlaneseq }
   0x4   :  { %348 = vmatpush3.bf16.msra.mxu0 %v23_v4  ;;  %v18_v9 = vpack.c.bf16 %v17_v8, %v16_v7  ;;  %v330_v10 = vld [vmem:[%s499_s2] ss:$0 sm:$0xff]  ;;  %vm86_vm2 = vcmask 64512   ;;  %s421_s2 = smov 112   ;;  %vm220_vm4 = vcmask 1043456   ;;  %s422_s25 = smov [#allocation2]  }
   0x5   :  { %349 = vmatprep.subr.bf16.mxu0 %v418_v3  ;;  %v183_v28 = vshrl.u32 %v182_v27, 7  ;;  %v185_v29 = vand.u32 127, %v182_v27  ;;  %s319_s26 = sshll.u32 %s422_s25, 4  ;;  %s320_s26 = int_to_ptr.vmem [resolvable:$true] %s319_s26 }
   0x6   :  { %s394_s27 = scalar_lea.vmem %s320_s26, 256  ;;  %p399_p1 = scmp.lt.s32.totalorder %s320_s26, %s320_s26 }
   0x7   :  { %vm186_vm3 = vcmp.ge.s32.totalorder %v183_v28, %v185_v29  ;;  %p395_p0 = scmp.ne.s32.totalorder %s320_s26, %s394_s27  ;;  %p400_p2 = scmp.lt.s32.totalorder %s394_s27, %s394_s27 }
   0x8   :  { %350 = vmatpush3.bf16.msra.mxu0 %v24_v6 }
   0x9   :  { %361 = vmatprep.subr.bf16.mxu0 %v418_v3  ;;  %p401_p3 = por %p400_p2, %p399_p1 }
   0xb   :  { %352 = vmatmul.mubr.msk.bf16.vlgmr.msra.gmra.mrb[0].mxu0 %vm32_vm1, %v18_v9  ;;  %p402_p4 = pnand %p401_p3, %p395_p0 }
   0xc   :  { %363 = vmatprep.mubr.msk.bf16.mxu0 %vm419_vm0, %v418_v3 }
  0xde   :  { %v70_v11 = vpop.f32.mrb[0].mxu0 }
  0xdf   :  { %v71_v12 = vadd.f32 %v330_v10, %v70_v11  ;;  %v353_v13 = vpop.f32.mrb[1].mxu0 }
  0xe0   :  { %v73_v14 = vpop.f32.mrb[2].mxu0 }
  0xe1   :  { %v74_v15 = vadd.f32 %v330_v10, %v73_v14  ;;  %v354_v16 = vpop.f32.mrb[3].mxu0  ;;  %v81_v17 = vpack.c.bf16 %v71_v12, %v71_v12  ;;  %v77_v21 = vmul.f32 0.17677669, %v71_v12 }
  0xe3   :  { %84 = vrot.lane.b32.xlu0 %v81_v17, %s420_s0  ;;  %v82_v18 = vpack.c.bf16 %v74_v15, %v74_v15  ;;  %v79_v24 = vpack.c.bf16 %v77_v21, %v77_v21  ;;  %v78_v25 = vmul.f32 0.17677669, %v74_v15 }
  0xe5   :  { %v80_v26 = vpack.c.bf16 %v78_v25, %v78_v25 }
  0xe7   :  { %134 = vrot.lane.b32.xlu0 %v82_v18, %s420_s0 }
 0x155   :  { %v85_v19 = vpop.permute.xlu0 %84 }
 0x156   :  { %v91_v20 = vsel %vm86_vm2, %v85_v19, 0 }
 0x157   :  { %356 = vmatpush3.bf16.xpose.msra.mxu1 %v91_v20 }
 0x158   :  { %367 = vmatprep.subr.bf16.mxu1 %v418_v3 }
 0x159   :  { %v135_v22 = vpop.permute.xlu0 %134 }
 0x15a   :  { %v140_v23 = vsel %vm86_vm2, %v135_v22, 0 }
 0x15b   :  { %362 = vmatpush3.bf16.xpose.msra.mxu0 %v140_v23 }
 0x15c   :  { %373 = vmatprep.subr.bf16.mxu0 %v418_v3 }
 0x15e   :  { %358 = vmatmul.mubr.msk.bf16.vlgmr.msra.gmra.mrb[0].mxu1 %vm86_vm2, %v79_v24 }
 0x15f   :  { %369 = vmatprep.mubr.msk.bf16.mxu1 %vm419_vm0, %v418_v3 }
 0x162   :  { %364 = vmatmul.mubr.msk.bf16.vlgmr.msra.gmra.mrb[4].mxu0 %vm86_vm2, %v80_v26 }
 0x163   :  { %375 = vmatprep.mubr.msk.bf16.mxu0 %vm419_vm0, %v418_v3 }
 0x231   :  { %v127_v30 = vpop.f32.mrb[0].mxu1 }
 0x232   :  { %v189_v31 = vsel %vm186_vm3, %v127_v30, -1e+30  ;;  %v359_v32 = vpop.f32.mrb[1].mxu1 }
 0x233   :  { %v130_v33 = vpop.f32.mrb[2].mxu1  ;;  %v191_v34 = vsel %vm86_vm2, %v189_v31, -inf }
 0x234   :  { %192 = vmax.xlane.f32.xlu1 %v191_v34  ;;  %v360_v35 = vpop.f32.mrb[3].mxu1 }
 0x235   :  { %v176_v36 = vpop.f32.mrb[4].mxu0 }
 0x236   :  { %v190_v37 = vsel %vm186_vm3, %v176_v36, -1e+30  ;;  %v365_v38 = vpop.f32.mrb[5].mxu0 }
 0x237   :  { %v179_v39 = vpop.f32.mrb[6].mxu0  ;;  %v194_v40 = vsel %vm86_vm2, %v190_v37, -inf }
 0x238   :  { %195 = vmax.xlane.f32.xlu1 %v194_v40  ;;  %v366_v41 = vpop.f32.mrb[7].mxu0 }
 0x249   :  { %215 = vrot.lane.b32.xlu1 %v81_v17, %s421_s2 }
 0x2c1   :  { %v193_v42 = vpop.xlane.xlu1 %192 }
 0x2c2   :  { %v197_v43 = vsub.f32 %v189_v31, %v193_v42 }
 0x2c4   :  { %v199_v44 = vmul.f32 1.442695, %v197_v43 }
 0x2c5   :  { %v196_v45 = vpop.xlane.xlu1 %195 }
 0x2c6   :  { %386 = vpow2.f32 %v199_v44  ;;  %v198_v46 = vsub.f32 %v190_v37, %v196_v45 }
 0x2c8   :  { %v201_v47 = vmul.f32 1.442695, %v198_v46 }
 0x2c9   :  { %v216_v48 = vpop.permute.xlu1 %215 }
 0x2ca   :  { %388 = vpow2.f32 %v201_v47  ;;  %v222_v49 = vsel %vm220_vm4, %v216_v48, 0 }
 0x2cb   :  { %368 = vmatpush3.bf16.msra.mxu1 %v222_v49 }
 0x2d0   :  { %v387_v50 = vpop.eup %386 }
 0x2d1   :  { %v203_v51 = vsel %vm86_vm2, %v387_v50, 0.0 }
 0x2d2   :  { %204 = vadd.xlane.f32.xlu0 %v203_v51 }
 0x2d4   :  { %v389_v52 = vpop.eup %388 }
 0x2d5   :  { %v206_v53 = vsel %vm86_vm2, %v389_v52, 0.0 }
 0x2d6   :  { %207 = vadd.xlane.f32.xlu1 %v206_v53 }
 0x2e7   :  { %264 = vrot.lane.b32.xlu1 %v82_v18, %s421_s2 }
 0x35f   :  { %v205_v54 = vpop.xlane.xlu0 %204 }
 0x360   :  { %390 = vrcp.f32 %v205_v54 }
 0x363   :  { %v208_v55 = vpop.xlane.xlu1 %207 }
 0x364   :  { %392 = vrcp.f32 %v208_v55 }
 0x367   :  { %v265_v56 = vpop.permute.xlu1 %264 }
 0x368   :  { %v270_v57 = vsel %vm220_vm4, %v265_v56, 0 }
 0x369   :  { %374 = vmatpush3.bf16.msra.mxu0 %v270_v57 }
 0x36a   :  { %v391_v58 = vpop.eup %390 }
 0x36b   :  { %v211_v59 = vmul.f32 %v391_v58, %v387_v50 }
 0x36d   :  { %v213_v60 = vpack.c.bf16 %v211_v59, %v211_v59 }
 0x36e   :  { %v393_v61 = vpop.eup %392 }
 0x36f   :  { %v212_v62 = vmul.f32 %v393_v61, %v389_v52  ;;  %370 = vmatmul.mubr.msk.bf16.vlgmr.msra.gmra.mrb[4].mxu1 %vm86_vm2, %v213_v60 }
 0x371   :  { %v214_v63 = vpack.c.bf16 %v212_v62, %v212_v62 }
 0x373   :  { %376 = vmatmul.mubr.msk.bf16.vlgmr.msra.gmra.mrb[8].mxu0 %vm86_vm2, %v214_v63 }
 0x442   :  { %v258_v0 = vpop.f32.mrb[4].mxu1 }
 0x443   :  { %312 = vst.msk [vmem:[#allocation2] sm:$0xff] %vm86_vm2, %v258_v0  ;;  %v371_v1 = vpop.f32.mrb[5].mxu1 }
 0x444   :  { %v261_v2 = vpop.f32.mrb[6].mxu1 }
 0x445   :  { %v372_v3 = vpop.f32.mrb[7].mxu1 }
 0x446   :  { %v306_v4 = vpop.f32.mrb[8].mxu0 }
 0x447   :  { %313 = vst.msk [vmem:[#allocation2 + $0x8] sm:$0xff] %vm86_vm2, %v306_v4  ;;  %v377_v5 = vpop.f32.mrb[9].mxu0 }
 0x448   :  { %v309_v6 = vpop.f32.mrb[10].mxu0 }
 0x449   :  { %405 = shalt.err (!%p402_p4)
}
 0x44a   :  { %s406_s30 = scalar_lea.hbm %s500_s3, 256 }
 0x44b   :  { %p407_p5 = scmp.ne.s32.totalorder %s500_s3, %s406_s30  ;;  %p410_p6 = scmp.lt.u32.totalorder %s406_s30, %s500_s3 }
 0x44d   :  { %p412_p7 = pnand %p410_p6, %p407_p5 }
 0x44f   :  { %415 = shalt.err (!%p412_p7)
}
 0x450   :  { %s423_s8 = smov 128   ;;  %s424_s9 = smov 8   ;;  %v378_v7 = vpop.f32.mrb[11].mxu0 }
 0x451   :  { %325 = dma.vmem_to_hbm [thread:$0]  %s320_s26, 256, %s500_s3, [#allocation3], %s423_s8, %s423_s8, %s424_s9  }
 0x452   :  { %416 = dma.done.wait [#allocation3], 256  }
 0x453   :  { %417 = vsyncadd [#allocation3], 4294967040 }
 0x454   :  { %329 = vsyncpa [#allocation3], 1 }

</bundles_post_ra>
